<compile_context>
chip_gen: v5e
topology: v5e:2x2
jax: 0.10.0
libtpu: 0.0.40
codegen_flags: <defaults>
</compile_context>

<pallas_src>
import jax
import jax.numpy as jnp
from jax import lax
from jax.experimental import pallas as pl
from jax.experimental.pallas import tpu as pltpu


NSPLIT = 2                               # leading "parallel" grid axis (2 TCs on v7x)
VMEM_STREAM_BUDGET = 12 * 1024 * 1024    # bytes for double-buffered input streams


def _round_up(x, m):
    return ((x + m - 1) // m) * m


def _cdiv(a, b):
    return (a + b - 1) // b


# ------------------------------ Pallas kernel ------------------------------ #

def _gram(a, b):
    # (R, L) x (R, L), contracting the lane axis -> (R, R) f32 on the MXU.
    return lax.dot_general(a, b, dimension_numbers=(((1,), (1,)), ((), ())),
                           preferred_element_type=jnp.float32)


def generator_cov_kernel(psi_ref, wpsi_ref, grad_ref, wgrad_ref, cov_ref, dcov_ref):
    """Accumulates per-half weighted covariance Grams over lane chunks.

    psi_ref  : (2, R, ts)  stacked psi_X / psi_Y chunk (lane = sample)
    wpsi_ref : (2, 1, ts)  per-sample weights (zero in padded lanes)
    grad_ref : (2, R, tg)  stacked gradient chunk (lane = sample*D + d)
    wgrad_ref: (2, 1, tg)  weights[i] * friction[d] per lane (zero in padded lanes)
    cov_ref  : (2, R, R)   output block: un-normalized weighted psi covariances
    dcov_ref : (2, R, R)   output block: un-normalized weighted gradient covariances
    """
    i = pl.program_id(1)

    @pl.when(i == 0)
    def _init():
        cov_ref[...] = jnp.zeros_like(cov_ref)
        dcov_ref[...] = jnp.zeros_like(dcov_ref)

    # One-sided full-weight trick: Gram(w * x, x) = sum_l w[l] x[:, l] x[:, l]^T is the
    # weighted covariance; only one VPU broadcast-multiply per operand, no sqrt.
    for h in range(2):                      # static unroll over the X / Y halves
        psi = psi_ref[h]                    # (R, ts)
        g = grad_ref[h]                     # (R, tg)
        cov_ref[h] += _gram(psi * wpsi_ref[h], psi)
        dcov_ref[h] += _gram(g * wgrad_ref[h], g)


def generator_covariances_pallas(psi, wpsi, grad, wgrad, *, r, ts, tg, num_chunks):
    inner = num_chunks // NSPLIT
    grid = (NSPLIT, inner)

    # Double-buffered input-stream bytes + margin for accumulators / bookkeeping.
    stream_bytes = 2 * 4 * 2 * (r + 1) * (ts + tg)
    vmem_limit = int(min(64 * 1024 * 1024,
                         max(16 * 1024 * 1024, stream_bytes + 4 * 1024 * 1024)))

    lane_elems = 2 * (r + 1) * num_chunks * (ts + tg)
    cost = pl.CostEstimate(
        flops=int(4 * r * r * num_chunks * (ts + tg) + 2 * lane_elems),
        transcendentals=0,
        bytes_accessed=int(4 * lane_elems + 4 * 2 * NSPLIT * 2 * r * r))

    cov_out, dcov_out = pl.pallas_call(
        generator_cov_kernel,
        out_shape=(jax.ShapeDtypeStruct((NSPLIT * 2, r, r), jnp.float32),
                   jax.ShapeDtypeStruct((NSPLIT * 2, r, r), jnp.float32)),
        grid=grid,
        in_specs=[
            pl.BlockSpec((2, r, ts), lambda c, i: (0, 0, c * inner + i)),  # psi
            pl.BlockSpec((2, 1, ts), lambda c, i: (0, 0, c * inner + i)),  # psi weights
            pl.BlockSpec((2, r, tg), lambda c, i: (0, 0, c * inner + i)),  # grad
            pl.BlockSpec((2, 1, tg), lambda c, i: (0, 0, c * inner + i)),  # grad weights
        ],
        out_specs=(pl.BlockSpec((2, r, r), lambda c, i: (c, 0, 0)),
                   pl.BlockSpec((2, r, r), lambda c, i: (c, 0, 0))),
        compiler_params=pltpu.CompilerParams(
            dimension_semantics=("parallel", "arbitrary"),
            vmem_limit_bytes=vmem_limit),
        cost_estimate=cost,
    )(psi, wpsi, grad, wgrad)
    return cov_out, dcov_out


# ------------------------------- Module glue ------------------------------- #

class GeneratorLoss:
    """JAX/Pallas port of mlcolvar GeneratorLoss (u_stat=True, cell=None,
    descriptors_derivatives=None).

    __call__(output, gradient, weights): `gradient` is d(output)/d(input) per output
    component, shape (N, R, D) — the torch code builds it with autograd + transpose;
    here the caller provides it (e.g. via jax.jacrev)."""

    def __init__(self, r, eta, friction, alpha, cell=None, n_dim=3,
                 u_stat=True, lambdas_seed=42):
        self.r = int(r)
        self.eta = float(eta)
        self.alpha = float(alpha)
        self.friction = jnp.asarray(friction, jnp.float32)
        self.cell = cell
        self.n_dim = int(n_dim)
        self.u_stat = bool(u_stat)
        # torch: self.lambdas = Parameter(10 * torch.randn(r))
        key = jax.random.PRNGKey(lambdas_seed)
        self.lambdas = 10.0 * jax.random.normal(key, (self.r,), jnp.float32)
        # TODO(synk): u_stat=False branch, cell scaling and SmartDerivatives /
        # descriptors_derivatives contraction are not implemented (defaults used).

    def __call__(self, output, gradient, weights):
        output = jnp.asarray(output, jnp.float32)
        gradient = jnp.asarray(gradient, jnp.float32)
        weights = jnp.asarray(weights, jnp.float32)

        n, r = output.shape
        d = gradient.shape[-1]
        if n % 2 != 0:
            raise ValueError("u_stat=True split requires an even number of samples")
        s = n // 2
        if s < 2:
            raise ValueError("need >= 2 samples per half for the 1/(n-1) prefactor")

        friction_full = jnp.repeat(self.friction, self.n_dim)            # (D,)

        # Small per-lane weight vectors; the big tensors are NOT scaled in the wrapper.
        w2 = weights.reshape(2, s)                                        # (2, S)
        wpsi = w2[:, None, :]                                             # (2, 1, S)
        wgrad = (w2[:, :, None] * friction_full[None, None, :]).reshape(2, 1, s * d)

        # Lane-dense stacked layouts: (half, feature, lane).
        psi = output.reshape(2, s, r).transpose(0, 2, 1)                  # (2, R, S)
        grad = gradient.reshape(2, s, r, d).transpose(0, 2, 1, 3).reshape(2, r, s * d)
        # TODO(synk): if the gradient producer can emit an (R, N, D) layout directly,
        # this transpose (one HBM pass over the largest tensor) disappears.

        # Lane tiling: chunk size from the VMEM budget, 256-aligned (MXU cadence).
        lg = s * d
        tg_cap = max(256, (VMEM_STREAM_BUDGET // (2 * 4 * 2 * (r + 1) * 2)) // 256 * 256)
        num_chunks = _round_up(max(1, _cdiv(lg, tg_cap)), NSPLIT)
        tg = _round_up(_cdiv(lg, num_chunks), 256)
        ts = _round_up(_cdiv(s, num_chunks), 256)

        # Padded lanes are masked by zero weights, so the data pad value is irrelevant;
        # the pad only guarantees every BlockSpec window maps to valid memory.
        # TODO(synk): an in-kernel ragged-tail mask would drop this pad (one extra HBM
        # pass over `grad` if XLA does not fuse it with the transpose above).
        psi = jnp.pad(psi, ((0, 0), (0, 0), (0, num_chunks * ts - s)))
        wpsi = jnp.pad(wpsi, ((0, 0), (0, 0), (0, num_chunks * ts - s)))
        grad = jnp.pad(grad, ((0, 0), (0, 0), (0, num_chunks * tg - lg)))
        wgrad = jnp.pad(wgrad, ((0, 0), (0, 0), (0, num_chunks * tg - lg)))

        cov_out, dcov_out = generator_covariances_pallas(
            psi, wpsi, grad, wgrad, r=r, ts=ts, tg=tg, num_chunks=num_chunks)

        # O(r^2) epilogue in plain JAX (keeps both TensorCores streaming the data).
        inv_nm1 = 1.0 / float(s - 1)
        cov = cov_out.reshape(NSPLIT, 2, r, r).sum(axis=0) * inv_nm1      # (2, R, R)
        dcov = dcov_out.reshape(NSPLIT, 2, r, r).sum(axis=0) * inv_nm1
        cov_X, cov_Y = cov[0], cov[1]
        dcov_X, dcov_Y = dcov[0], dcov[1]

        dl = jnp.diag(self.lambdas ** 2)
        W1 = (self.eta * cov_X + dcov_X) @ dl
        W2 = (self.eta * cov_Y + dcov_Y) @ dl
        loss_ef = jnp.trace((cov_X @ dl @ W2 + cov_Y @ dl @ W1) / 2
                            - cov_X @ dl - cov_Y @ dl)
        I = jnp.eye(r, dtype=jnp.float32)
        loss_ortho = self.alpha * jnp.trace((I - cov_X) @ (I - cov_Y))
        return loss_ef + loss_ortho, loss_ef, loss_ortho


# ---------------------------- pure-JAX reference ---------------------------- #

def _reference(output, gradient, weights, friction, lambdas, eta, alpha, n_dim):
    friction_full = jnp.repeat(friction, n_dim)
    grad_pos = gradient * jnp.sqrt(friction_full)
    s = output.shape[0] // 2
    dl = jnp.diag(lambdas ** 2)

    def cov2(X, w):
        nn = X.shape[0]
        return (nn / (nn - 1)) * jnp.einsum('ij,ik,i->jk', X, X, w) / nn

    def cov3(X, w):
        nn = X.shape[0]
        return (nn / (nn - 1)) * jnp.einsum('ijk,ilk,i->jl', X, X, w) / nn

    psiX, psiY = output[:s], output[s:]
    gX, gY = grad_pos[:s], grad_pos[s:]
    wX, wY = weights[:s], weights[s:]
    cov_X, cov_Y = cov2(psiX, wX), cov2(psiY, wY)
    dcov_X, dcov_Y = cov3(gX, wX), cov3(gY, wY)
    W1 = (eta * cov_X + dcov_X) @ dl
    W2 = (eta * cov_Y + dcov_Y) @ dl
    loss_ef = jnp.trace((cov_X @ dl @ W2 + cov_Y @ dl @ W1) / 2
                        - cov_X @ dl - cov_Y @ dl)
    I = jnp.eye(output.shape[1], dtype=output.dtype)
    loss_ortho = alpha * jnp.trace((I - cov_X) @ (I - cov_Y))
    return loss_ef + loss_ortho, loss_ef, loss_ortho


def _check(got, want, tol=1e-2):
    for g, w in zip(got, want):
        err = abs(float(g) - float(w)) / max(1.0, abs(float(w)))
        assert err < tol, (float(g), float(w))


# ---------------------------------- main ------------------------------------ #

if __name__ == "__main__":
    key = jax.random.PRNGKey(0)
    k1, k2, k3, k4, k5, k6, k7, k8, k9 = jax.random.split(key, 9)

    # --- test 1: tiny MLP case (gradient built with jacrev, like torch autograd) ---
    N, n_atoms, n_dim, r, hidden = 8, 4, 3, 4, 16
    D = n_atoms * n_dim
    eta, alpha = 0.05, 1.0

    x = jax.random.normal(k1, (N, D), dtype=jnp.float32)
    W1 = 0.3 * jax.random.normal(k2, (D, hidden), dtype=jnp.float32)
    b1 = 0.1 * jax.random.normal(k3, (hidden,), dtype=jnp.float32)
    W2 = 0.3 * jax.random.normal(k4, (hidden, r), dtype=jnp.float32)
    weights = jax.random.uniform(k5, (N,), jnp.float32, 0.5, 1.5)
    friction = jax.random.uniform(k6, (n_atoms,), jnp.float32, 0.5, 2.0)

    def net_single(xi):
        return jnp.tanh(xi @ W1 + b1) @ W2      # (R,)

    output = jax.vmap(net_single)(x)                       # (N, R)
    gradient = jax.vmap(jax.jacrev(net_single))(x)         # (N, R, D)

    module = GeneratorLoss(r=r, eta=eta, friction=friction, alpha=alpha, n_dim=n_dim)
    res = module(output, gradient, weights)
    jax.block_until_ready(res[0])
    ref = _reference(output, gradient, weights, friction, module.lambdas,
                     eta, alpha, n_dim)
    _check(res, ref)

    # --- test 2: larger random case exercising the multi-chunk reduction path ---
    N2, n_atoms2, r2 = 128, 1365, 4
    D2 = n_atoms2 * 3
    output2 = jax.random.normal(k7, (N2, r2), dtype=jnp.float32)
    gradient2 = jax.random.normal(k8, (N2, r2, D2), dtype=jnp.float32) * 0.1
    weights2 = jax.random.uniform(k9, (N2,), jnp.float32, 0.5, 1.5)
    friction2 = jnp.linspace(0.5, 2.0, n_atoms2, dtype=jnp.float32)

    module2 = GeneratorLoss(r=r2, eta=0.02, friction=friction2, alpha=0.7, n_dim=3)
    res2 = module2(output2, gradient2, weights2)
    jax.block_until_ready(res2[0])
    ref2 = _reference(output2, gradient2, weights2, friction2, module2.lambdas,
                      0.02, 0.7, 3)
    _check(res2, ref2)

    print("KERNEL_OK")
</pallas_src>

<mosaic_0001>
module attributes {stable_mosaic.version = 11 : i64} {
  func.func @generator_cov_kernel(%arg0: i32, %arg1: i32, %arg2: memref<2x4x256xf32, #tpu.memory_space<vmem>>, %arg3: memref<2x1x256xf32, #tpu.memory_space<vmem>>, %arg4: memref<2x4x256xf32, #tpu.memory_space<vmem>>, %arg5: memref<2x1x256xf32, #tpu.memory_space<vmem>>, %arg6: memref<2x4x4xf32, #tpu.memory_space<vmem>>, %arg7: memref<2x4x4xf32, #tpu.memory_space<vmem>>) attributes {dimension_semantics = [#tpu.dimension_semantics<parallel>, #tpu.dimension_semantics<arbitrary>], iteration_bounds = array<i64: 2, 1>, scalar_prefetch = 0 : i64, scratch_operands = 0 : i64, tpu.core_type = #tpu.core_type<tc>, window_params = [{transform_indices = @transform_0, window_bounds = array<i64: 2, 4, 256>}, {transform_indices = @transform_1, window_bounds = array<i64: 2, 1, 256>}, {transform_indices = @transform_2, window_bounds = array<i64: 2, 4, 256>}, {transform_indices = @transform_3, window_bounds = array<i64: 2, 1, 256>}, {transform_indices = @transform_4, window_bounds = array<i64: 2, 4, 4>}, {transform_indices = @transform_5, window_bounds = array<i64: 2, 4, 4>}]} {
    %c0_i32 = arith.constant 0 : i32
    %0 = arith.cmpi eq, %arg1, %c0_i32 : i32
    %1 = arith.extui %0 : i1 to i32
    %c0_i32_0 = arith.constant 0 : i32
    %2 = arith.cmpi ne, %1, %c0_i32_0 : i32
    scf.if %2 {
      %cst_50 = arith.constant 0.000000e+00 : f32
      %55 = vector.broadcast %cst_50 : f32 to vector<2x4x4xf32>
      %c0_51 = arith.constant 0 : index
      %c0_52 = arith.constant 0 : index
      %c0_53 = arith.constant 0 : index
      %56 = vector.load %arg6[%c0_51, %c0_52, %c0_53] : memref<2x4x4xf32, #tpu.memory_space<vmem>>, vector<2x4x4xf32>
      tpu.vector_store %arg6[%c0_51, %c0_52, %c0_53], %55 {strides = array<i32>} : memref<2x4x4xf32, #tpu.memory_space<vmem>>, vector<2x4x4xf32>,
      %cst_54 = arith.constant 0.000000e+00 : f32
      %57 = vector.broadcast %cst_54 : f32 to vector<2x4x4xf32>
      %c0_55 = arith.constant 0 : index
      %c0_56 = arith.constant 0 : index
      %c0_57 = arith.constant 0 : index
      %58 = vector.load %arg7[%c0_55, %c0_56, %c0_57] : memref<2x4x4xf32, #tpu.memory_space<vmem>>, vector<2x4x4xf32>
      tpu.vector_store %arg7[%c0_55, %c0_56, %c0_57], %57 {strides = array<i32>} : memref<2x4x4xf32, #tpu.memory_space<vmem>>, vector<2x4x4xf32>,
    } else {
    }
    %c0 = arith.constant 0 : index
    %c0_1 = arith.constant 0 : index
    %c0_2 = arith.constant 0 : index
    %3 = vector.load %arg2[%c0, %c0_1, %c0_2] : memref<2x4x256xf32, #tpu.memory_space<vmem>>, vector<1x4x256xf32>
    %4 = vector.shape_cast %3 : vector<1x4x256xf32> to vector<4x256xf32>
    %c0_3 = arith.constant 0 : index
    %c0_4 = arith.constant 0 : index
    %c0_5 = arith.constant 0 : index
    %5 = vector.load %arg4[%c0_3, %c0_4, %c0_5] : memref<2x4x256xf32, #tpu.memory_space<vmem>>, vector<1x4x256xf32>
    %6 = vector.shape_cast %5 : vector<1x4x256xf32> to vector<4x256xf32>
    %c0_6 = arith.constant 0 : index
    %c0_7 = arith.constant 0 : index
    %c0_8 = arith.constant 0 : index
    %7 = vector.load %arg6[%c0_6, %c0_7, %c0_8] : memref<2x4x4xf32, #tpu.memory_space<vmem>>, vector<1x4x4xf32>
    %8 = vector.shape_cast %7 : vector<1x4x4xf32> to vector<4x4xf32>
    %c0_9 = arith.constant 0 : index
    %c0_10 = arith.constant 0 : index
    %c0_11 = arith.constant 0 : index
    %9 = vector.load %arg3[%c0_9, %c0_10, %c0_11] : memref<2x1x256xf32, #tpu.memory_space<vmem>>, vector<1x1x256xf32>
    %10 = vector.shape_cast %9 : vector<1x1x256xf32> to vector<1x256xf32>
    %11 = vector.broadcast %10 : vector<1x256xf32> to vector<4x256xf32>
    %12 = arith.mulf %4, %11 : vector<4x256xf32>
    %cst = arith.constant dense<0.000000e+00> : vector<4x4xf32>
    %13 = tpu.matmul %12, %4, %cst {dimension_numbers = #tpu.dot_dimension_numbers<[1], [1], [0], [0], [0, 0, 1, 0], [], []>} : vector<4x256xf32>, vector<4x256xf32>, vector<4x4xf32> -> vector<4x4xf32>
    %14 = arith.addf %8, %13 : vector<4x4xf32>
    %c0_12 = arith.constant 0 : index
    %c0_13 = arith.constant 0 : index
    %c0_14 = arith.constant 0 : index
    %15 = vector.load %arg6[%c0_12, %c0_13, %c0_14] : memref<2x4x4xf32, #tpu.memory_space<vmem>>, vector<1x4x4xf32>
    %16 = vector.shape_cast %15 : vector<1x4x4xf32> to vector<4x4xf32>
    %17 = vector.shape_cast %14 : vector<4x4xf32> to vector<1x4x4xf32>
    tpu.vector_store %arg6[%c0_12, %c0_13, %c0_14], %17 {strides = array<i32>} : memref<2x4x4xf32, #tpu.memory_space<vmem>>, vector<1x4x4xf32>,
    %c0_15 = arith.constant 0 : index
    %c0_16 = arith.constant 0 : index
    %c0_17 = arith.constant 0 : index
    %18 = vector.load %arg7[%c0_15, %c0_16, %c0_17] : memref<2x4x4xf32, #tpu.memory_space<vmem>>, vector<1x4x4xf32>
    %19 = vector.shape_cast %18 : vector<1x4x4xf32> to vector<4x4xf32>
    %c0_18 = arith.constant 0 : index
    %c0_19 = arith.constant 0 : index
    %c0_20 = arith.constant 0 : index
    %20 = vector.load %arg5[%c0_18, %c0_19, %c0_20] : memref<2x1x256xf32, #tpu.memory_space<vmem>>, vector<1x1x256xf32>
    %21 = vector.shape_cast %20 : vector<1x1x256xf32> to vector<1x256xf32>
    %22 = vector.broadcast %21 : vector<1x256xf32> to vector<4x256xf32>
    %23 = arith.mulf %6, %22 : vector<4x256xf32>
    %cst_21 = arith.constant dense<0.000000e+00> : vector<4x4xf32>
    %24 = tpu.matmul %23, %6, %cst_21 {dimension_numbers = #tpu.dot_dimension_numbers<[1], [1], [0], [0], [0, 0, 1, 0], [], []>} : vector<4x256xf32>, vector<4x256xf32>, vector<4x4xf32> -> vector<4x4xf32>
    %25 = arith.addf %19, %24 : vector<4x4xf32>
    %c0_22 = arith.constant 0 : index
    %c0_23 = arith.constant 0 : index
    %c0_24 = arith.constant 0 : index
    %26 = vector.load %arg7[%c0_22, %c0_23, %c0_24] : memref<2x4x4xf32, #tpu.memory_space<vmem>>, vector<1x4x4xf32>
    %27 = vector.shape_cast %26 : vector<1x4x4xf32> to vector<4x4xf32>
    %28 = vector.shape_cast %25 : vector<4x4xf32> to vector<1x4x4xf32>
    tpu.vector_store %arg7[%c0_22, %c0_23, %c0_24], %28 {strides = array<i32>} : memref<2x4x4xf32, #tpu.memory_space<vmem>>, vector<1x4x4xf32>,
    %c1 = arith.constant 1 : index
    %c0_25 = arith.constant 0 : index
    %c0_26 = arith.constant 0 : index
    %29 = vector.load %arg2[%c1, %c0_25, %c0_26] : memref<2x4x256xf32, #tpu.memory_space<vmem>>, vector<1x4x256xf32>
    %30 = vector.shape_cast %29 : vector<1x4x256xf32> to vector<4x256xf32>
    %c1_27 = arith.constant 1 : index
    %c0_28 = arith.constant 0 : index
    %c0_29 = arith.constant 0 : index
    %31 = vector.load %arg4[%c1_27, %c0_28, %c0_29] : memref<2x4x256xf32, #tpu.memory_space<vmem>>, vector<1x4x256xf32>
    %32 = vector.shape_cast %31 : vector<1x4x256xf32> to vector<4x256xf32>
    %c1_30 = arith.constant 1 : index
    %c0_31 = arith.constant 0 : index
    %c0_32 = arith.constant 0 : index
    %33 = vector.load %arg6[%c1_30, %c0_31, %c0_32] : memref<2x4x4xf32, #tpu.memory_space<vmem>>, vector<1x4x4xf32>
    %34 = vector.shape_cast %33 : vector<1x4x4xf32> to vector<4x4xf32>
    %c1_33 = arith.constant 1 : index
    %c0_34 = arith.constant 0 : index
    %c0_35 = arith.constant 0 : index
    %35 = vector.load %arg3[%c1_33, %c0_34, %c0_35] : memref<2x1x256xf32, #tpu.memory_space<vmem>>, vector<1x1x256xf32>
    %36 = vector.shape_cast %35 : vector<1x1x256xf32> to vector<1x256xf32>
    %37 = vector.broadcast %36 : vector<1x256xf32> to vector<4x256xf32>
    %38 = arith.mulf %30, %37 : vector<4x256xf32>
    %cst_36 = arith.constant dense<0.000000e+00> : vector<4x4xf32>
    %39 = tpu.matmul %38, %30, %cst_36 {dimension_numbers = #tpu.dot_dimension_numbers<[1], [1], [0], [0], [0, 0, 1, 0], [], []>} : vector<4x256xf32>, vector<4x256xf32>, vector<4x4xf32> -> vector<4x4xf32>
    %40 = arith.addf %34, %39 : vector<4x4xf32>
    %c1_37 = arith.constant 1 : index
    %c0_38 = arith.constant 0 : index
    %c0_39 = arith.constant 0 : index
    %41 = vector.load %arg6[%c1_37, %c0_38, %c0_39] : memref<2x4x4xf32, #tpu.memory_space<vmem>>, vector<1x4x4xf32>
    %42 = vector.shape_cast %41 : vector<1x4x4xf32> to vector<4x4xf32>
    %43 = vector.shape_cast %40 : vector<4x4xf32> to vector<1x4x4xf32>
    tpu.vector_store %arg6[%c1_37, %c0_38, %c0_39], %43 {strides = array<i32>} : memref<2x4x4xf32, #tpu.memory_space<vmem>>, vector<1x4x4xf32>,
    %c1_40 = arith.constant 1 : index
    %c0_41 = arith.constant 0 : index
    %c0_42 = arith.constant 0 : index
    %44 = vector.load %arg7[%c1_40, %c0_41, %c0_42] : memref<2x4x4xf32, #tpu.memory_space<vmem>>, vector<1x4x4xf32>
    %45 = vector.shape_cast %44 : vector<1x4x4xf32> to vector<4x4xf32>
    %c1_43 = arith.constant 1 : index
    %c0_44 = arith.constant 0 : index
    %c0_45 = arith.constant 0 : index
    %46 = vector.load %arg5[%c1_43, %c0_44, %c0_45] : memref<2x1x256xf32, #tpu.memory_space<vmem>>, vector<1x1x256xf32>
    %47 = vector.shape_cast %46 : vector<1x1x256xf32> to vector<1x256xf32>
    %48 = vector.broadcast %47 : vector<1x256xf32> to vector<4x256xf32>
    %49 = arith.mulf %32, %48 : vector<4x256xf32>
    %cst_46 = arith.constant dense<0.000000e+00> : vector<4x4xf32>
    %50 = tpu.matmul %49, %32, %cst_46 {dimension_numbers = #tpu.dot_dimension_numbers<[1], [1], [0], [0], [0, 0, 1, 0], [], []>} : vector<4x256xf32>, vector<4x256xf32>, vector<4x4xf32> -> vector<4x4xf32>
    %51 = arith.addf %45, %50 : vector<4x4xf32>
    %c1_47 = arith.constant 1 : index
    %c0_48 = arith.constant 0 : index
    %c0_49 = arith.constant 0 : index
    %52 = vector.load %arg7[%c1_47, %c0_48, %c0_49] : memref<2x4x4xf32, #tpu.memory_space<vmem>>, vector<1x4x4xf32>
    %53 = vector.shape_cast %52 : vector<1x4x4xf32> to vector<4x4xf32>
    %54 = vector.shape_cast %51 : vector<4x4xf32> to vector<1x4x4xf32>
    tpu.vector_store %arg7[%c1_47, %c0_48, %c0_49], %54 {strides = array<i32>} : memref<2x4x4xf32, #tpu.memory_space<vmem>>, vector<1x4x4xf32>,
    return
  }
  func.func @transform_0(%arg0: i32, %arg1: i32) -> (i32, i32, i32) {
    %c1_i32 = arith.constant 1 : i32
    %0 = arith.muli %arg0, %c1_i32 : i32
    %1 = arith.addi %0, %arg1 : i32
    %c0_i32 = arith.constant 0 : i32
    %c0_i32_0 = arith.constant 0 : i32
    %c0_i32_1 = arith.constant 0 : i32
    return %c0_i32, %c0_i32_0, %1 : i32, i32, i32
  }
  func.func @transform_1(%arg0: i32, %arg1: i32) -> (i32, i32, i32) {
    %c1_i32 = arith.constant 1 : i32
    %0 = arith.muli %arg0, %c1_i32 : i32
    %1 = arith.addi %0, %arg1 : i32
    %c0_i32 = arith.constant 0 : i32
    %c0_i32_0 = arith.constant 0 : i32
    %c0_i32_1 = arith.constant 0 : i32
    return %c0_i32, %c0_i32_0, %1 : i32, i32, i32
  }
  func.func @transform_2(%arg0: i32, %arg1: i32) -> (i32, i32, i32) {
    %c1_i32 = arith.constant 1 : i32
    %0 = arith.muli %arg0, %c1_i32 : i32
    %1 = arith.addi %0, %arg1 : i32
    %c0_i32 = arith.constant 0 : i32
    %c0_i32_0 = arith.constant 0 : i32
    %c0_i32_1 = arith.constant 0 : i32
    return %c0_i32, %c0_i32_0, %1 : i32, i32, i32
  }
  func.func @transform_3(%arg0: i32, %arg1: i32) -> (i32, i32, i32) {
    %c1_i32 = arith.constant 1 : i32
    %0 = arith.muli %arg0, %c1_i32 : i32
    %1 = arith.addi %0, %arg1 : i32
    %c0_i32 = arith.constant 0 : i32
    %c0_i32_0 = arith.constant 0 : i32
    %c0_i32_1 = arith.constant 0 : i32
    return %c0_i32, %c0_i32_0, %1 : i32, i32, i32
  }
  func.func @transform_4(%arg0: i32, %arg1: i32) -> (i32, i32, i32) {
    %c0_i32 = arith.constant 0 : i32
    %c0_i32_0 = arith.constant 0 : i32
    %c0_i32_1 = arith.constant 0 : i32
    return %arg0, %c0_i32, %c0_i32_0 : i32, i32, i32
  }
  func.func @transform_5(%arg0: i32, %arg1: i32) -> (i32, i32, i32) {
    %c0_i32 = arith.constant 0 : i32
    %c0_i32_0 = arith.constant 0 : i32
    %c0_i32_1 = arith.constant 0 : i32
    return %arg0, %c0_i32, %c0_i32_0 : i32, i32, i32
  }
}

</mosaic_0001>

<bundles_post_ra>
// kernel: tpu_custom_call.1
= control target key start
LH: loop header
LB: loop body
LE: loop exit
PB: predicated region body
PF: predicated region fallthrough
CT: control target
= control target key end

     0   :  { %s1567_s0 = inlined_call_operand.hbm [shape: f32[2,4,512], index: 0, kind: input, shape index: {}]   ;;  %s1568_s1 = inlined_call_operand.hbm [shape: f32[2,1,512], index: 1, kind: input, shape index: {}]   ;;  %s1569_s2 = inlined_call_operand.hbm [shape: f32[2,4,512], index: 2, kind: input, shape index: {}]   ;;  %s1570_s3 = inlined_call_operand.hbm [shape: f32[2,1,512], index: 3, kind: input, shape index: {}]   ;;  %s1571_s4 = inlined_call_operand.hbm [shape: f32[4,4,4], index: 4, kind: output, shape index: {0}]   ;;  %s1572_s5 = inlined_call_operand.hbm [shape: f32[4,4,4], index: 5, kind: output, shape index: {1}]  }
   0x1   :  { %1589 = sst [smem:[#allocation26_spill]] %s1567_s0 }
   0x2   :  { %1590 = sst [smem:[#allocation27_spill]] %s1568_s1 }
   0x3   :  { %1591 = sst [smem:[#allocation28_spill]] %s1571_s4 }
   0x4   :  { %1592 = sst [smem:[#allocation29_spill]] %s1572_s5 }
   0x5   :  { %11 = vsyncpa [#allocation3], 0 }
   0x6   :  { %13 = vsyncpa [#allocation3 + $0x1], 0 }
   0x7   :  { %14 = vsyncpa [#allocation6], 0 }
   0x8   :  { %16 = vsyncpa [#allocation6 + $0x1], 0 }
   0x9   :  { %17 = vsyncpa [#allocation9], 0 }
   0xa   :  { %19 = vsyncpa [#allocation9 + $0x1], 0 }
   0xb   :  { %20 = vsyncpa [#allocation4], 0 }
   0xc   :  { %22 = vsyncpa [#allocation4 + $0x1], 0 }
   0xd   :  { %23 = vsyncpa [#allocation12], 0 }
   0xe   :  { %25 = vsyncpa [#allocation12 + $0x1], 0  ;;  %s1321_s18 = smov 0   ;;  %s1323_s19 = smov 0  }
   0xf   :  { %s1325_s20 = smov 0   ;;  %s1327_s21 = smov 0  }
  0x10   :  { %s1329_s22 = smov 0   ;;  %s1331_s23 = smov 0  }
  0x11 LB: > { %1593 = sst [smem:[#allocation18_spill]] %s1260_s18  ;;  %s1352_s24 = sadd.s32 4294967295, %s1280_s23   ;;  %s1280_s23 = sphi %s1331_s23, %s31_s23   ;;  %s1276_s22 = sphi %s1329_s22, %s1627_s22   ;;  %s1272_s21 = sphi %s1327_s21, %s1626_s21   ;;  %s1268_s20 = sphi %s1325_s20, %s1622_s20   ;;  %s1264_s19 = sphi %s1323_s19, %s1625_s19   ;;  %s1260_s18 = sphi %s1321_s18, %s1624_s18  }
  0x12   : > { %1594 = sst [smem:[#allocation19_spill]] %s1268_s20  ;;  %s907_s25 = sadd.s32 4294967294, %s1280_s23  }
  0x13   : > { %1595 = sst [smem:[#allocation20_spill]] %s1272_s21  ;;  %s43_s26 = sadd.s32 1, %s1276_s22 }
  0x14   : > { %1596 = sst [smem:[#allocation21_spill]] %s1280_s23  ;;  %s52_s27 = sadd.s32 1, %s1268_s20 }
  0x15   : > { %p45_p0 = scmp.ge.s32.totalorder %s43_s26, 2  ;;  %p59_p1 = scmp.ne.s32.totalorder %s1268_s20, %s1264_s19 }
  0x16   : > { %p60_p2 = scmp.eq.s32.totalorder %s1280_s23, 0  ;;  %p65_p3 = scmp.ne.s32.totalorder %s1264_s19, %s1260_s18 }
  0x17   : > { %s1629_s26 = smov (%p45_p0, %s43_s26), 0  ;;  %p66_p5 = scmp.eq.s32.totalorder %s1352_s24, 0 }
  0x18   : > { %1597 = sst [smem:[#allocation22_spill]] %s1629_s26  ;;  %p1364_p4 = por %p60_p2, %p59_p1 }
  0x19   : > { %s49_s29 = ssub.s32 %s1276_s22, %s1629_s26  ;;  %p173_p6 = scmp.eq.s32.totalorder %s1352_s24, 1 }
  0x1a   : > { %p50_p7 = scmp.eq.s32.totalorder %s49_s29, 0  ;;  %p1372_p8 = por %p66_p5, %p65_p3 }
  0x1b   : > { %p1376_p9 = por %p173_p6, %p59_p1  ;;  %p179_p10 = scmp.eq.s32.totalorder %s907_s25, 1 }
  0x1c   : > { %s1381_s7 = scalar_select %p50_p7, %s1268_s20, %s52_s27  }
  0x1d   : > { %s1600_s6 = scalar_select %p1376_p9, 1, 0 }
  0x1e   : > { %1602 = sst [smem:[#allocation24_spill]] %s1381_s7  ;;  %p1383_p11 = por %p179_p10, %p65_p3 }
  0x1f   : > { %1601 = sst [smem:[#allocation23_spill]] %s1600_s6  ;;  %p909_p12 = scmp.ge.s32.totalorder %s1280_s23, 2 }
  0x20   : > { %s1603_s8 = scalar_select %p1383_p11, 1, 0 }
  0x21   : > { %p979_p13 = scmp.lt.s32.totalorder %s1280_s23, 2  ;;  %s1390_s9 = sand.u32 1, %s1268_s20  }
  0x22   : > { %1604 = sst [smem:[#allocation25_spill]] %s1603_s8  ;;  %s248_s10 = sand.u32 1, %s1280_s23  }
  0x23   : > { %s1574_s11 = sshll.u32 %s1390_s9, 2  ;;  %p1396_p0 = pnand %p979_p13, %p1364_p4 }
  0x24   : > { %s1575_s13 = sshll.u32 %s1276_s22, 1  ;;  %s1606_s1 = sld [smem:[#allocation27_spill]] }
  0x25   : > { %s252_s25 = scalar_lea.vmem [#allocation5], %s1574_s11  ;;  %p920_p1 = scmp.ge.s32.totalorder %s1280_s23, 1 }
  0x26   : > { %s260_s27 = sshll.u32 %s252_s25, 4  ;;  %s1409_s28 = scalar_lea.sflag [#allocation6], %s248_s10  ;;  %s261_s27 = int_to_ptr.vmem [resolvable:$true] %s260_s27 }
  0x27   : > { %s1577_s29 = smov 64   ;;  %s1578_s26 = smov 32  }
  0x28   : > { %s1579_s7 = smov 2   ;;  %p313_p2 = scmp.lt.s32.totalorder %s1280_s23, 3 }
  0x29   : > { %s910_s15 = sshll.u32 %s1390_s9, 4  ;;  %s1608_s0 = sld [smem:[#allocation26_spill]] }
  0x2a   : > { %s257_s16 = scalar_lea.hbm %s1606_s1, %s1575_s13  ;;  %p1418_p3 = pnand %p920_p1, %p313_p2 }
  0x2b   : > { %s258_s17 = sshll.u32 %s257_s16, 4  ;;  %s943_s16 = sshll.u32 %s1276_s22, 3  ;;  %s259_s17 = int_to_ptr.hbm [resolvable:$true] %s258_s17 }
  0x2c   : > { %965 = dma.hbm_to_vmem [thread:$0]  (!%p1396_p0), %s259_s17, 64, %s261_s27, %s1409_s28, %s1577_s29, %s1578_s26, %s1579_s7  }
  0x2d   : > { %s229_s13 = scalar_lea.vmem [#allocation2], %s910_s15  ;;  %s226_s17 = scalar_lea.sflag [#allocation3], %s1390_s9 }
  0x2e   : > { %s238_s1 = sshll.u32 %s229_s13, 4  ;;  %s1285_s27 = smov 256   ;;  %s239_s1 = int_to_ptr.vmem [resolvable:$true] %s238_s1 }
  0x2f   : > { %s235_s11 = scalar_lea.hbm %s1608_s0, %s943_s16  ;;  %s1286_s29 = smov 128  }
  0x30   : > { %s236_s20 = sshll.u32 %s235_s11, 4  ;;  %s1287_s26 = smov 8   ;;  %s237_s20 = int_to_ptr.hbm [resolvable:$true] %s236_s20 }
  0x31   : > { %962 = dma.hbm_to_vmem [thread:$0]  (!%p1396_p0), %s237_s20, 256, %s239_s1, %s226_s17, %s1285_s27, %s1286_s29, %s1287_s26  }
  0x32   : > { %s280_s10 = scalar_lea.hbm %s1569_s2, %s943_s16  ;;  %s274_s23 = scalar_lea.vmem [#allocation7], %s910_s15 }
  0x33   : > { %s281_s0 = sshll.u32 %s280_s10, 4  ;;  %s283_s13 = sshll.u32 %s274_s23, 4  ;;  %s282_s0 = int_to_ptr.hbm [resolvable:$true] %s281_s0  ;;  %s284_s13 = int_to_ptr.vmem [resolvable:$true] %s283_s13 }
  0x34   : > { %968 = dma.hbm_to_vmem [thread:$0]  (!%p1396_p0), %s282_s0, 256, %s284_s13, %s1409_s28, %s1285_s27, %s1286_s29, %s1287_s26  }
  0x35   : > { %s1609_s11 = sshll.u32 %s1276_s22, 1  ;;  %s1610_s6 = sshll.u32 %s1390_s9, 2 }
  0x36   : > { %s302_s5 = scalar_lea.hbm %s1570_s3, %s1609_s11  ;;  %s297_s4 = scalar_lea.vmem [#allocation8], %s1610_s6 }
  0x37   : > { %s305_s21 = sshll.u32 %s297_s4, 4  ;;  %s303_s1 = sshll.u32 %s302_s5, 4  ;;  %s306_s21 = int_to_ptr.vmem [resolvable:$true] %s305_s21  ;;  %s304_s1 = int_to_ptr.hbm [resolvable:$true] %s303_s1 }
  0x38   : > { %s294_s20 = scalar_lea.sflag [#allocation9], %s1390_s9  ;;  %s1611_s7 = smov 2  }
  0x39   : > { %s1612_s15 = smov 32   ;;  %s1613_s23 = smov 64  }
  0x3a   : > { %971 = dma.hbm_to_vmem [thread:$0]  (!%p1396_p0), %s304_s1, 64, %s306_s21, %s294_s20, %s1613_s23, %s1612_s15, %s1611_s7  }
  0x3b   : > { %317 = sbr.rel (%p1418_p3) target bundleno = 285 (0x11d), region = 36  ;;  %s1452_s0 = sand.u32 (!%p1418_p3), 1, %s1264_s19  }
  0x3c   : > { %s921_s18 = sshll.u32 (!%p1418_p3), %s1452_s0, 4  ;;  %s320_s4 = scalar_lea.sflag (!%p1418_p3), [#allocation3], %s1452_s0 }
  0x3d   : > { %s1456_s5 = scalar_lea.vmem (!%p1418_p3), [#allocation2], %s921_s18 }
  0x40   : > { %1239 = dma.done.wait (%p1372_p8), %s320_s4, 256  }
  0x41   : > { %1241 = vsyncadd (%p1372_p8), %s320_s4, 4294967040  ;;  %s329_s21 = sand.u32 1, %s1352_s24   ;;  %s922_s26 = sshll.u32 %s1452_s0, 2 }
  0x42   : > { %s330_s6 = scalar_lea.sflag [#allocation6], %s329_s21  ;;  %s333_s8 = scalar_lea.vmem [#allocation5], %s922_s26 }
  0x43   : > { %1243 = dma.done.wait (%p1372_p8), %s330_s6, 320  }
  0x44   : > { %1245 = vsyncadd (%p1372_p8), %s330_s6, 4294966976  ;;  %s1468_s9 = scalar_lea.vmem [#allocation7], %s921_s18  ;;  %s350_s12 = scalar_lea.sflag [#allocation9], %s1452_s0 }
  0x45   : > { %s1471_s28 = scalar_lea.vmem [#allocation8], %s922_s26 }
  0x46   : > { %1247 = dma.done.wait (%p1372_p8), %s350_s12, 64  }
  0x47   : > { %1249 = vsyncadd (%p1372_p8), %s350_s12, 4294967232  ;;  %v423_v0 = vld [vmem:[%s333_s8] sm:$0x3]  ;;  %vm428_vm0 = vcmask 1043456   ;;  %v488_v7 = vld [vmem:[%s1471_s28] sm:$0x3] }
  0x48   : > { %v425_v1 = vperm.slane %v423_v0, 0  ;;  %v426_v2 = vperm.slane %v423_v0, 1  ;;  %v420_v3 = vld [vmem:[%s1456_s5] sm:$0xff]  ;;  %v491_v8 = vperm.slane %v488_v7, 1  ;;  %v490_v9 = vperm.slane %v488_v7, 0  ;;  %v421_v13 = vld [vmem:[%s1468_s9] sm:$0xff] }
  0x49   : > { %v930_v16 = vld [vmem:[%s333_s8 + $0x2] sm:$0x3]  ;;  %v927_v24 = vld [vmem:[%s1456_s5 + $0x8] sm:$0xff]  ;;  %s925_s24 = sshll.u32 %s1452_s0, 3  ;;  %vm415_vm1 = vcmask 27648   ;;  %v1288_v44 = vmov 0.0  }
  0x4a   : > { %v427_v4 = vrot.slane %v426_v2, 4  ;;  %v492_v10 = vrot.slane %v491_v8, 4  ;;  %v560_v19 = vperm.slane %v930_v16, 1  ;;  %v559_v20 = vperm.slane %v930_v16, 0  ;;  %v933_v27 = vld [vmem:[%s1471_s28 + $0x2] sm:$0x3] }
  0x4b   : > { %v625_v30 = vperm.slane %v933_v27, 1  ;;  %v624_v31 = vperm.slane %v933_v27, 0  ;;  %v928_v35 = vld [vmem:[%s1468_s9 + $0x8] sm:$0xff]  ;;  %s393_s30 = scalar_lea.vmem [#allocation10], %s925_s24  ;;  %s1614_s29 = sld [smem:[#allocation20_spill]] }
  0x4c   : > { %v429_v5 = vsel %vm428_vm0, %v425_v1, %v427_v4  ;;  %v493_v14 = vsel %vm428_vm0, %v490_v9, %v492_v10  ;;  %v561_v21 = vrot.slane %v560_v19, 4  ;;  %416 = vst.msk [vmem:[%s393_s30] sm:$0xf] %vm415_vm1, %v1288_v44  ;;  %s1490_s14 = scalar_lea.vmem [#allocation11], %s925_s24  ;;  %s1615_s25 = sld [smem:[#allocation28_spill]] }
  0x4d   : > { %v431_v6 = vmul.f32 %v429_v5, %v420_v3  ;;  %v495_v15 = vmul.f32 %v493_v14, %v421_v13  ;;  %v626_v32 = vrot.slane %v625_v30, 4  ;;  %417 = vst.msk [vmem:[%s393_s30 + $0x4] sm:$0xf] %vm415_vm1, %v1288_v44  ;;  %s702_s11 = sshll.u32 %s393_s30, 4  ;;  %s685_s20 = scalar_lea.sflag [#allocation4], %s1452_s0  ;;  %s703_s11 = int_to_ptr.vmem [resolvable:$true] %s702_s11 }
  0x4e   : > { %v562_v25 = vsel %vm428_vm0, %v559_v20, %v561_v21  ;;  %418 = vst.msk [vmem:[%s1490_s14] sm:$0xf] %vm415_vm1, %v1288_v44 }
  0x4f   : > { %433 = vst [vmem:[#allocation1] ss:$2 sm:$0xff] %v431_v6  ;;  %v564_v26 = vmul.f32 %v927_v24, %v562_v25  ;;  %v627_v36 = vsel %vm428_vm0, %v624_v31, %v626_v32 }
  0x50   : > { %v629_v37 = vmul.f32 %v928_v35, %v627_v36  ;;  %419 = vst.msk [vmem:[%s1490_s14 + $0x4] sm:$0xf] %vm415_vm1, %v1288_v44 }
  0x51   : > { %s945_s16 = sshll.u32 %s1614_s29, 3 }
  0x52   : > { %s701_s10 = scalar_lea.hbm %s1615_s25, %s945_s16  ;;  %s1178_s4 = scalar_lea.hbm %s1615_s25, 16 }
  0x53   : > { %v422_v46 = vld [vmem:[%s393_s30] sm:$0xf]  ;;  %s704_s1 = sshll.u32 %s701_s10, 4  ;;  %s705_s1 = int_to_ptr.hbm [resolvable:$true] %s704_s1 }
  0x54   : > { %v929_v56 = vld [vmem:[%s393_s30 + $0x4] sm:$0xf]  ;;  %s1172_s7 = sshra.s32 %s705_s1, 4  ;;  %s1173_s7 = int_to_ptr.hbm [resolvable:$true] %s1172_s7 }
  0x55   : > { %v487_v51 = vld [vmem:[%s1490_s14] sm:$0xf]  ;;  %s1174_s15 = scalar_lea.hbm %s1173_s7, 8  ;;  %p1179_p7 = scmp.lt.s32.totalorder %s1173_s7, %s1615_s25 }
  0x56   : > { %v434_v11 = vld.sshfl [vmem:[#allocation1] sm:$0xff pattern:$0x75316420]  ;;  %v435_v12 = vld.sshfl [vmem:[#allocation1 + $0x8] sm:$0xff pattern:$0x75316420]  ;;  %p1175_p4 = scmp.ne.s32.totalorder %s1173_s7, %s1174_s15  ;;  %p1180_p8 = scmp.lt.s32.totalorder %s1178_s4, %s1174_s15 }
  0x57   : > { %439 = vst [vmem:[#allocation1] ss:$2 sm:$0xff] %v420_v3 }
  0x58   : > { %p1176_p5 = pnand %p1175_p4, %p1376_p9  ;;  %p1181_p10 = por %p1180_p8, %p1179_p7 }
  0x5a   : > { %p1177_p6 = pneg %p1176_p5 }
  0x5c   : > { %p1182_p13 = pnand %p1181_p10, %p1177_p6 }
  0x5e   : > { %v440_v17 = vld.sshfl [vmem:[#allocation1] sm:$0xff pattern:$0x75316420]  ;;  %v441_v18 = vld.sshfl [vmem:[#allocation1 + $0x8] sm:$0xff pattern:$0x75316420] }
  0x5f   : > { %497 = vst [vmem:[#allocation1] ss:$2 sm:$0xff] %v495_v15  ;;  %459 = vmatpush.xpose.msra.mxu0 %v440_v17  ;;  %479 = vmatpush.xpose.msra.mxu1 %v441_v18 }
  0x62   : > { %460 = vmatmul.f32.vlgmr.msra.gmra.mxu0 %v434_v11  ;;  %480 = vmatmul.f32.vlgmr.msra.gmra.mxu1 %v435_v12 }
  0x66   : > { %v498_v22 = vld.sshfl [vmem:[#allocation1] sm:$0xff pattern:$0x75316420]  ;;  %v499_v23 = vld.sshfl [vmem:[#allocation1 + $0x8] sm:$0xff pattern:$0x75316420] }
  0x67   : > { %503 = vst [vmem:[#allocation1] ss:$2 sm:$0xff] %v421_v13 }
  0x6e   : > { %v504_v28 = vld.sshfl [vmem:[#allocation1] sm:$0xff pattern:$0x75316420]  ;;  %v505_v29 = vld.sshfl [vmem:[#allocation1 + $0x8] sm:$0xff pattern:$0x75316420] }
  0x6f   : > { %523 = vmatpush.xpose.msra.mxu2 %v504_v28  ;;  %543 = vmatpush.xpose.msra.mxu3 %v505_v29  ;;  %566 = vst [vmem:[#allocation1] ss:$2 sm:$0xff] %v564_v26 }
  0x72   : > { %524 = vmatmul.f32.vlgmr.msra.gmra.mxu2 %v498_v22  ;;  %544 = vmatmul.f32.vlgmr.msra.gmra.mxu3 %v499_v23 }
  0x76   : > { %v567_v33 = vld.sshfl [vmem:[#allocation1] sm:$0xff pattern:$0x75316420]  ;;  %v568_v34 = vld.sshfl [vmem:[#allocation1 + $0x8] sm:$0xff pattern:$0x75316420] }
  0x77   : > { %572 = vst [vmem:[#allocation1] ss:$2 sm:$0xff] %v927_v24 }
  0x7e   : > { %v573_v38 = vld.sshfl [vmem:[#allocation1] sm:$0xff pattern:$0x75316420]  ;;  %v574_v39 = vld.sshfl [vmem:[#allocation1 + $0x8] sm:$0xff pattern:$0x75316420] }
  0x7f   : > { %631 = vst [vmem:[#allocation1] ss:$2 sm:$0xff] %v629_v37  ;;  %592 = vmatpush.xpose.msrb.mxu0 %v573_v38  ;;  %612 = vmatpush.xpose.msrb.mxu1 %v574_v39 }
  0x82   : > { %593 = vmatmul.f32.vlgmr.msrb.gmra.mxu0 %v567_v33  ;;  %613 = vmatmul.f32.vlgmr.msrb.gmra.mxu1 %v568_v34 }
  0x86   : > { %v632_v40 = vld.sshfl [vmem:[#allocation1] sm:$0xff pattern:$0x75316420]  ;;  %v633_v41 = vld.sshfl [vmem:[#allocation1 + $0x8] sm:$0xff pattern:$0x75316420] }
  0x87   : > { %637 = vst [vmem:[#allocation1] ss:$2 sm:$0xff] %v928_v35 }
  0x8e   : > { %v638_v42 = vld.sshfl [vmem:[#allocation1] sm:$0xff pattern:$0x75316420]  ;;  %v639_v43 = vld.sshfl [vmem:[#allocation1 + $0x8] sm:$0xff pattern:$0x75316420] }
  0x8f   : > { %657 = vmatpush.xpose.msrb.mxu2 %v638_v42  ;;  %677 = vmatpush.xpose.msrb.mxu3 %v639_v43 }
  0x92   : > { %658 = vmatmul.f32.vlgmr.msrb.gmra.mxu2 %v632_v40  ;;  %678 = vmatmul.f32.vlgmr.msrb.gmra.mxu3 %v633_v41 }
  0xdf   : > { %v461_v45 = vpop.f32.mrf.mxu0  ;;  %v481_v47 = vpop.f32.mrf.mxu1 }
  0xe0   : > { %v482_v48 = vadd.f32 %v481_v47, %v461_v45 }
  0xe2   : > { %v484_v49 = vadd.f32 %v482_v48, %v422_v46 }
  0xe4   : > { %486 = vst.msk [vmem:[%s393_s30] sm:$0xf] %vm415_vm1, %v484_v49 }
  0xf5   : > { %v525_v50 = vpop.f32.mrf.mxu2  ;;  %v545_v52 = vpop.f32.mrf.mxu3 }
  0xf6   : > { %v546_v53 = vadd.f32 %v545_v52, %v525_v50 }
  0xf8   : > { %v548_v54 = vadd.f32 %v546_v53, %v487_v51 }
  0xfa   : > { %549 = vst.msk [vmem:[%s1490_s14] sm:$0xf] %vm415_vm1, %v548_v54 }
  0xff   : > { %v594_v55 = vpop.f32.mrf.mxu0  ;;  %v614_v57 = vpop.f32.mrf.mxu1 }
 0x100   : > { %v615_v58 = vadd.f32 %v614_v57, %v594_v55 }
 0x102   : > { %v617_v59 = vadd.f32 %v929_v56, %v615_v58 }
 0x104   : > { %931 = vst.msk [vmem:[%s393_s30 + $0x4] sm:$0xf] %vm415_vm1, %v617_v59 }
 0x105   : > { %1185 = shalt.err (!%p1182_p13)
}
 0x106   : > { %s1289_s26 = smov 64   ;;  %s1290_s6 = smov 4   ;;  %v932_v61 = vld [vmem:[%s1490_s14 + $0x4] sm:$0xf] }
 0x107   : > { %955 = dma.vmem_to_hbm [thread:$0]  (%p1376_p9), %s703_s11, 128, %s705_s1, %s685_s20, %s1289_s26, %s1289_s26, %s1290_s6  }
 0x108   : > { %s1617_s12 = sld [smem:[#allocation29_spill]]  ;;  %s719_s24 = sshll.u32 %s1490_s14, 4  ;;  %s720_s24 = int_to_ptr.vmem [resolvable:$true] %s719_s24 }
 0x109   : > { %s690_s17 = scalar_lea.sflag [#allocation12], %s1452_s0 }
 0x10e   : > { %s718_s28 = scalar_lea.hbm %s1617_s12, %s945_s16  ;;  %s1206_s11 = scalar_lea.hbm %s1617_s12, 16 }
 0x10f   : > { %s721_s30 = sshll.u32 %s718_s28, 4  ;;  %s722_s30 = int_to_ptr.hbm [resolvable:$true] %s721_s30 }
 0x110   : > { %s1200_s27 = sshra.s32 %s722_s30, 4  ;;  %s1201_s27 = int_to_ptr.hbm [resolvable:$true] %s1200_s27 }
 0x111   : > { %s1202_s29 = scalar_lea.hbm %s1201_s27, 8  ;;  %p1207_p3 = scmp.lt.s32.totalorder %s1201_s27, %s1617_s12 }
 0x112   : > { %p1203_p0 = scmp.ne.s32.totalorder %s1201_s27, %s1202_s29  ;;  %p1208_p4 = scmp.lt.s32.totalorder %s1206_s11, %s1202_s29 }
 0x114   : > { %p1204_p1 = pnand %p1203_p0, %p1376_p9  ;;  %p1209_p5 = por %p1208_p4, %p1207_p3 }
 0x115   : > { %v659_v60 = vpop.f32.mrf.mxu2  ;;  %v679_v62 = vpop.f32.mrf.mxu3 }
 0x116   : > { %v680_v63 = vadd.f32 %v679_v62, %v659_v60  ;;  %p1205_p2 = pneg %p1204_p1 }
 0x118   : > { %v682_v0 = vadd.f32 %v932_v61, %v680_v63  ;;  %p1210_p6 = pnand %p1209_p5, %p1205_p2 }
 0x11a   : > { %934 = vst.msk [vmem:[%s1490_s14 + $0x4] sm:$0xf] %vm415_vm1, %v682_v0 }
 0x11b   : > { %1213 = shalt.err (!%p1210_p6)
}
 0x11c   : > { %956 = dma.vmem_to_hbm [thread:$0]  (%p1376_p9), %s720_s24, 128, %s722_s30, %s690_s17, %s1289_s26, %s1289_s26, %s1290_s6  }
 0x11d PF: > { %s1618_s0 = sld [smem:[#allocation18_spill]]  ;;  %p973_p7 = pnand %p909_p12, %p1383_p11 }
 0x11e   : > { %s1620_s7 = sld [smem:[#allocation21_spill]] }
 0x11f   : > { %p974_p8 = pneg %p973_p7 }
 0x123   : > { %s736_s15 = sand.u32 1, %s1618_s0  }
 0x124   : > { %s737_s23 = scalar_lea.sflag [#allocation4], %s736_s15 }
 0x125   : > { %1251 = dma.done.wait (%p974_p8), %s737_s23, 128  }
 0x126   : > { %1253 = vsyncadd (%p974_p8), %s737_s23, 4294967168  ;;  %s747_s18 = scalar_lea.sflag [#allocation12], %s736_s15 }
 0x127   : > { %1255 = dma.done.wait (%p974_p8), %s747_s18, 128  }
 0x128   : > { %1257 = vsyncadd (%p974_p8), %s747_s18, 4294967168  ;;  %s31_s23 = sadd.s32 1, %s1620_s7   ;;  %s1621_s13 = sld [smem:[#allocation19_spill]] }
 0x129   : > { %p28_p10 = scmp.ge.s32.totalorder %s31_s23, 4   ;;  %s1622_s20 = sld [smem:[#allocation24_spill]] }
 0x12a   : > { %s1623_s4 = sld [smem:[#allocation22_spill]]  ;;  %s1624_s18 = smov %s1264_s19 }
 0x12b   : > { %s1626_s21 = smov %s1276_s22 }
 0x12c   :  { %30 = sbr.rel (!%p28_p10) target bundleno = 17 (0x11), region = 145 }
 0x12e   : > { %s1625_s19 = smov %s1621_s13 }
 0x130   : > { %s1627_s22 = smov %s1623_s4 }
 0x131   :  { %753 = vsyncpa [#allocation3], 1 }
 0x132   :  { %755 = vsyncpa [#allocation3 + $0x1], 1 }
 0x133   :  { %756 = vsyncpa [#allocation6], 1 }
 0x134   :  { %758 = vsyncpa [#allocation6 + $0x1], 1 }
 0x135   :  { %759 = vsyncpa [#allocation9], 1 }
 0x136   :  { %761 = vsyncpa [#allocation9 + $0x1], 1 }
 0x137   :  { %762 = vsyncpa [#allocation4], 1 }
 0x138   :  { %764 = vsyncpa [#allocation4 + $0x1], 1 }
 0x139   :  { %765 = vsyncpa [#allocation12], 1 }
 0x13a   :  { %767 = vsyncpa [#allocation12 + $0x1], 1 }

</bundles_post_ra>
